<compile_context>
chip_gen: v7x
topology: tpu7x:2x2x1
jax: 0.10.0
libtpu: 0.0.40
codegen_flags: <defaults>
</compile_context>

<pallas_src>
import functools

import jax
import jax.numpy as jnp
from jax.experimental import pallas as pl
from jax.experimental.pallas import tpu as pltpu

K = 7      # conv kernel size
PAD = 3    # conv padding


def _spatial_attn_kernel(t_ref, x_ref, o_ref, sum_ref, max_ref, *,
                         c_total, block_c, masked_tail):
    """One (batch, channel-tile) grid step.

    t_ref   : VMEM (2*K*W, W) stacked banded-Toeplitz matrices (mxu dtype).
    x_ref   : VMEM (block_c, H*W) lane-dense input channel tile.
    o_ref   : VMEM (H, W) output (leading N / C_out squeezed).
    sum_ref : VMEM (1, H*W) f32 running channel sum.
    max_ref : VMEM (1, H*W) f32 running channel max.
    """
    c = pl.program_id(1)
    last_c = pl.num_programs(1) - 1
    H, W = o_ref.shape

    # --- channel pooling for this tile (lane-dense, f32 accumulation) ------
    x = x_ref[...]                                           # (block_c, H*W)
    if masked_tail:
        # cdiv grid: the last channel tile may read past C; mask it out.
        ch = c * block_c + jax.lax.broadcasted_iota(jnp.int32, (block_c, 1), 0)
        valid_c = ch < c_total
        x_sum = jnp.where(valid_c, x, jnp.array(0, x.dtype))
        x_max = jnp.where(valid_c, x, jnp.array(-jnp.inf, x.dtype))
    else:
        x_sum = x
        x_max = x
    part_sum = jnp.sum(x_sum, axis=0, keepdims=True, dtype=jnp.float32)
    part_max = jnp.max(x_max, axis=0, keepdims=True).astype(jnp.float32)

    @pl.when(c == 0)
    def _init():
        sum_ref[...] = part_sum
        max_ref[...] = part_max

    @pl.when(c > 0)
    def _accumulate():
        sum_ref[...] = sum_ref[...] + part_sum
        max_ref[...] = jnp.maximum(max_ref[...], part_max)

    # --- finalize: fused 7x7 conv over (avg, max), once per batch element --
    @pl.when(c == last_c)
    def _finalize():
        def to_plane(v):
            # (1, H*W) -> (H, W) with static lane slices + sublane concat
            # (guaranteed lowering; once per batch element, so cheap).
            return jnp.concatenate(
                [v[:, y * W:(y + 1) * W] for y in range(H)], axis=0)

        # 1/C for the avg path is folded into the Toeplitz band host-side,
        # so the raw channel sum is fed directly.
        s_plane = to_plane(sum_ref[...])                     # (H, W) f32
        m_plane = to_plane(max_ref[...])                     # (H, W) f32

        row = jax.lax.broadcasted_iota(jnp.int32, (H, W), 0)
        planes = []
        for ky in range(K):                                  # unrolled, 7 taps
            dy = ky - PAD                                    # row (sublane) shift
            if dy == 0:
                planes += [s_plane, m_plane]
            else:
                sh = (-dy) % H                               # rolled[y] = plane[y+dy]
                valid = (row >= -dy) if dy < 0 else (row < H - dy)
                planes.append(jnp.where(valid, pltpu.roll(s_plane, shift=sh, axis=0), 0.0))
                planes.append(jnp.where(valid, pltpu.roll(m_plane, shift=sh, axis=0), 0.0))

        # Single MXU matmul: (H, 2*K*W) @ (2*K*W, W); accumulation stays f32.
        stacked = jnp.concatenate(planes, axis=-1).astype(t_ref.dtype)
        out = jnp.dot(stacked, t_ref[...], preferred_element_type=jnp.float32)
        o_ref[...] = out.astype(o_ref.dtype)


def _build_toeplitz(weight, W, c_total, dtype):
    """weight (1, 2, K, K) OIHW -> stacked banded Toeplitz (2*K*W, W).

    Row block (ky, c) satisfies
      T[(ky, c)][i, j] = w[0, c, ky, i - j + PAD]  if 0 <= i - j + PAD < K
    so that plane_c_shifted_by_ky @ T reproduces the zero-padded kx sweep.
    The avg band (c == 0) is pre-scaled by 1/C so the kernel can feed the raw
    channel sum.  Stacking order (ky-major, then avg/max) matches the kernel.
    """
    w = jnp.asarray(weight, jnp.float32)[0]                  # (2, K, K)
    w = w * jnp.array([1.0 / c_total, 1.0], jnp.float32)[:, None, None]
    i = jnp.arange(W)[:, None]                               # input x (rows)
    j = jnp.arange(W)[None, :]                               # output x (cols)
    kx = i - j + PAD                                         # (W, W)
    valid = ((kx >= 0) & (kx < K)).astype(jnp.float32)
    band = w[:, :, jnp.clip(kx, 0, K - 1)] * valid           # (2, K, W, W)
    band = jnp.transpose(band, (1, 0, 2, 3))                 # (K, 2, W, W)
    return band.reshape(2 * K * W, W).astype(dtype)


def spatial_attention(x, weight, *, block_c=None, mxu_dtype=jnp.bfloat16):
    """x: (N, C, H, W); weight: (1, 2, 7, 7) (PyTorch conv OIHW layout)."""
    N, C, H, W = x.shape
    HW = H * W
    itemsize = jnp.dtype(x.dtype).itemsize

    # Channel tile: ~4 MiB per tile (double-buffered by the pipeline), rounded
    # to the sublane granularity so the (8,128) block rule always holds.
    sub = max(8, 32 // itemsize)                 # 8 for f32, 16 for bf16, ...
    if block_c is None:
        budget = 4 * 1024 * 1024
        max_tc = max(1, budget // (HW * itemsize))
        if C <= max_tc or C < sub:
            block_c = C
        else:
            block_c = max(sub, (min(C, max_tc) // sub) * sub)
    assert block_c == C or block_c % 8 == 0, (block_c, C)
    num_c = pl.cdiv(C, block_c)
    masked_tail = (C % block_c) != 0

    # Lane-dense view for the pooling phase (free for contiguous NCHW).
    x_flat = x.reshape(N, C, HW)
    t = _build_toeplitz(weight, W, C, mxu_dtype)             # (2*K*W, W)

    kernel = functools.partial(_spatial_attn_kernel, c_total=C,
                               block_c=block_c, masked_tail=masked_tail)

    cost = pl.CostEstimate(
        flops=int(N * (2 * C * HW + 2 * H * (2 * K * W) * W)),
        transcendentals=0,
        bytes_accessed=int(N * C * HW * itemsize + N * HW * itemsize
                           + t.size * t.dtype.itemsize),
    )

    # Raise the scoped-VMEM limit only when the footprint needs it.
    need = (2 * block_c * HW * itemsize                      # 2x-buffered input
            + 2 * t.size * t.dtype.itemsize                  # 2x-buffered Toeplitz
            + 2 * 4 * HW                                     # sum / max scratch
            + 2 * HW * itemsize                              # output block
            + (2 * K + 4) * HW * 4)                          # finalize temporaries
    vmem_limit = None
    if need > 12 * (1 << 20):
        vmem_limit = int(min(need + (4 << 20), 64 << 20))

    # TODO(synk): for very large planes (W >= ~256) block-band the Toeplitz /
    # row-tile the finalize, and for v7x with N==1 fold an H-halves axis into
    # the parallel grid so the second TensorCore is not idle.
    return pl.pallas_call(
        kernel,
        out_shape=jax.ShapeDtypeStruct((N, 1, H, W), x.dtype),
        grid_spec=pltpu.PrefetchScalarGridSpec(
            num_scalar_prefetch=0,
            grid=(N, num_c),
            in_specs=[
                # Toeplitz weights: constant block index -> fetched once,
                # resident across the whole grid.
                pl.BlockSpec((2 * K * W, W), lambda n, c: (0, 0)),
                # Input: one lane-dense (block_c, H*W) channel tile per step.
                pl.BlockSpec((pl.Squeezed(), block_c, HW),
                             lambda n, c: (n, c, 0)),
            ],
            out_specs=pl.BlockSpec((pl.Squeezed(), pl.Squeezed(), H, W),
                                   lambda n, c: (n, 0, 0, 0)),
            scratch_shapes=[
                pltpu.VMEM((1, HW), jnp.float32),            # running channel sum
                pltpu.VMEM((1, HW), jnp.float32),            # running channel max
            ],
        ),
        compiler_params=pltpu.CompilerParams(
            dimension_semantics=("parallel", "arbitrary"),
            vmem_limit_bytes=vmem_limit),
        cost_estimate=cost,
    )(t, x_flat)


def spatial_attention_ref(x, weight):
    """Plain-JAX reference for sanity checking."""
    avg = jnp.mean(x, axis=1, keepdims=True)
    mx = jnp.max(x, axis=1, keepdims=True)
    pooled = jnp.concatenate([avg, mx], axis=1)              # (N, 2, H, W)
    return jax.lax.conv_general_dilated(
        pooled, jnp.asarray(weight, pooled.dtype),
        window_strides=(1, 1), padding=((PAD, PAD), (PAD, PAD)),
        dimension_numbers=("NCHW", "OIHW", "NCHW"),
        precision=jax.lax.Precision.HIGHEST)


if __name__ == "__main__":
    key = jax.random.PRNGKey(0)
    kx_, kw_ = jax.random.split(key)

    N, C, H, W = 2, 24, 16, 16
    x = jax.random.normal(kx_, (N, C, H, W), dtype=jnp.float32)
    weight = jax.random.normal(kw_, (1, 2, K, K), dtype=jnp.float32) * 0.1

    ref = spatial_attention_ref(x, weight)

    # (1) f32 MXU path, evenly tiled channel reduction (3 steps: init /
    #     accumulate / finalize all exercised).
    out = jax.block_until_ready(
        spatial_attention(x, weight, block_c=8, mxu_dtype=jnp.float32))
    assert out.shape == (N, 1, H, W), out.shape
    err = float(jnp.max(jnp.abs(out - ref)))
    assert jnp.allclose(out, ref, atol=1e-3, rtol=1e-3), err

    # (2) f32 MXU path, ragged last channel tile (24 = 16 + 8, masked).
    out = jax.block_until_ready(
        spatial_attention(x, weight, block_c=16, mxu_dtype=jnp.float32))
    err = float(jnp.max(jnp.abs(out - ref)))
    assert jnp.allclose(out, ref, atol=1e-3, rtol=1e-3), err

    # (3) default path: heuristic block_c, bf16 MXU operands (f32 accumulate).
    out = jax.block_until_ready(spatial_attention(x, weight))
    err = float(jnp.max(jnp.abs(out - ref)))
    assert jnp.allclose(out, ref, atol=5e-2, rtol=5e-2), err

    print("KERNEL_OK")
</pallas_src>

<mosaic_0001>
module attributes {stable_mosaic.version = 11 : i64} {
  func.func @_spatial_attn_kernel(%arg0: i32, %arg1: i32, %arg2: memref<224x16xf32, #tpu.memory_space<vmem>>, %arg3: memref<1x8x256xf32, #tpu.memory_space<vmem>>, %arg4: memref<1x1x16x16xf32, #tpu.memory_space<vmem>>, %arg5: memref<1x256xf32, #tpu.memory_space<vmem>>, %arg6: memref<1x256xf32, #tpu.memory_space<vmem>>) attributes {dimension_semantics = [#tpu.dimension_semantics<parallel>, #tpu.dimension_semantics<arbitrary>], iteration_bounds = array<i64: 2, 3>, scalar_prefetch = 0 : i64, scratch_operands = 2 : i64, tpu.core_type = #tpu.core_type<tc>, window_params = [{pipeline_mode = #tpu.pipeline_mode<synchronous>, transform_indices = @transform_0, window_bounds = array<i64: 224, 16>}, {transform_indices = @transform_1, window_bounds = array<i64: 1, 8, 256>}, {transform_indices = @transform_2, window_bounds = array<i64: 1, 1, 16, 16>}]} {
    %c0 = arith.constant 0 : index
    %c0_0 = arith.constant 0 : index
    %c0_1 = arith.constant 0 : index
    %0 = vector.load %arg3[%c0, %c0_0, %c0_1] : memref<1x8x256xf32, #tpu.memory_space<vmem>>, vector<1x8x256xf32>
    %1 = vector.shape_cast %0 : vector<1x8x256xf32> to vector<8x256xf32>
    %cst = arith.constant dense<0.000000e+00> : vector<256xf32>
    %2 = vector.multi_reduction <add>, %1, %cst [0] : vector<8x256xf32> to vector<256xf32>
    %3 = vector.shape_cast %2 : vector<256xf32> to vector<1x256xf32>
    %cst_2 = arith.constant dense<0xFF800000> : vector<256xf32>
    %4 = vector.multi_reduction <maximumf>, %1, %cst_2 [0] : vector<8x256xf32> to vector<256xf32>
    %5 = vector.shape_cast %4 : vector<256xf32> to vector<1x256xf32>
    %c0_i32 = arith.constant 0 : i32
    %6 = arith.cmpi eq, %arg1, %c0_i32 : i32
    %7 = arith.extui %6 : i1 to i32
    %c0_i32_3 = arith.constant 0 : i32
    %8 = arith.cmpi ne, %7, %c0_i32_3 : i32
    scf.if %8 {
      %c0_7 = arith.constant 0 : index
      %c0_8 = arith.constant 0 : index
      %15 = vector.load %arg5[%c0_7, %c0_8] : memref<1x256xf32, #tpu.memory_space<vmem>>, vector<1x256xf32>
      tpu.vector_store %arg5[%c0_7, %c0_8], %3 {strides = array<i32>} : memref<1x256xf32, #tpu.memory_space<vmem>>, vector<1x256xf32>,
      %c0_9 = arith.constant 0 : index
      %c0_10 = arith.constant 0 : index
      %16 = vector.load %arg6[%c0_9, %c0_10] : memref<1x256xf32, #tpu.memory_space<vmem>>, vector<1x256xf32>
      tpu.vector_store %arg6[%c0_9, %c0_10], %5 {strides = array<i32>} : memref<1x256xf32, #tpu.memory_space<vmem>>, vector<1x256xf32>,
    } else {
    }
    %c0_i32_4 = arith.constant 0 : i32
    %9 = arith.cmpi sgt, %arg1, %c0_i32_4 : i32
    %10 = arith.extui %9 : i1 to i32
    %c0_i32_5 = arith.constant 0 : i32
    %11 = arith.cmpi ne, %10, %c0_i32_5 : i32
    scf.if %11 {
      %c0_7 = arith.constant 0 : index
      %c0_8 = arith.constant 0 : index
      %15 = vector.load %arg5[%c0_7, %c0_8] : memref<1x256xf32, #tpu.memory_space<vmem>>, vector<1x256xf32>
      %16 = arith.addf %15, %3 : vector<1x256xf32>
      %c0_9 = arith.constant 0 : index
      %c0_10 = arith.constant 0 : index
      %17 = vector.load %arg5[%c0_9, %c0_10] : memref<1x256xf32, #tpu.memory_space<vmem>>, vector<1x256xf32>
      tpu.vector_store %arg5[%c0_9, %c0_10], %16 {strides = array<i32>} : memref<1x256xf32, #tpu.memory_space<vmem>>, vector<1x256xf32>,
      %c0_11 = arith.constant 0 : index
      %c0_12 = arith.constant 0 : index
      %18 = vector.load %arg6[%c0_11, %c0_12] : memref<1x256xf32, #tpu.memory_space<vmem>>, vector<1x256xf32>
      %19 = arith.maximumf %18, %5 : vector<1x256xf32>
      %c0_13 = arith.constant 0 : index
      %c0_14 = arith.constant 0 : index
      %20 = vector.load %arg6[%c0_13, %c0_14] : memref<1x256xf32, #tpu.memory_space<vmem>>, vector<1x256xf32>
      tpu.vector_store %arg6[%c0_13, %c0_14], %19 {strides = array<i32>} : memref<1x256xf32, #tpu.memory_space<vmem>>, vector<1x256xf32>,
    } else {
    }
    %c2_i32 = arith.constant 2 : i32
    %12 = arith.cmpi eq, %arg1, %c2_i32 : i32
    %13 = arith.extui %12 : i1 to i32
    %c0_i32_6 = arith.constant 0 : i32
    %14 = arith.cmpi ne, %13, %c0_i32_6 : i32
    scf.if %14 {
      %c0_7 = arith.constant 0 : index
      %c0_8 = arith.constant 0 : index
      %15 = vector.load %arg5[%c0_7, %c0_8] : memref<1x256xf32, #tpu.memory_space<vmem>>, vector<1x256xf32>
      %16 = vector.extract_strided_slice %15 {offsets = [0, 0], sizes = [1, 16], strides = [1, 1]} : vector<1x256xf32> to vector<1x16xf32>
      %17 = vector.extract_strided_slice %15 {offsets = [0, 16], sizes = [1, 16], strides = [1, 1]} : vector<1x256xf32> to vector<1x16xf32>
      %18 = vector.extract_strided_slice %15 {offsets = [0, 32], sizes = [1, 16], strides = [1, 1]} : vector<1x256xf32> to vector<1x16xf32>
      %19 = vector.extract_strided_slice %15 {offsets = [0, 48], sizes = [1, 16], strides = [1, 1]} : vector<1x256xf32> to vector<1x16xf32>
      %20 = vector.extract_strided_slice %15 {offsets = [0, 64], sizes = [1, 16], strides = [1, 1]} : vector<1x256xf32> to vector<1x16xf32>
      %21 = vector.extract_strided_slice %15 {offsets = [0, 80], sizes = [1, 16], strides = [1, 1]} : vector<1x256xf32> to vector<1x16xf32>
      %22 = vector.extract_strided_slice %15 {offsets = [0, 96], sizes = [1, 16], strides = [1, 1]} : vector<1x256xf32> to vector<1x16xf32>
      %23 = vector.extract_strided_slice %15 {offsets = [0, 112], sizes = [1, 16], strides = [1, 1]} : vector<1x256xf32> to vector<1x16xf32>
      %24 = vector.extract_strided_slice %15 {offsets = [0, 128], sizes = [1, 16], strides = [1, 1]} : vector<1x256xf32> to vector<1x16xf32>
      %25 = vector.extract_strided_slice %15 {offsets = [0, 144], sizes = [1, 16], strides = [1, 1]} : vector<1x256xf32> to vector<1x16xf32>
      %26 = vector.extract_strided_slice %15 {offsets = [0, 160], sizes = [1, 16], strides = [1, 1]} : vector<1x256xf32> to vector<1x16xf32>
      %27 = vector.extract_strided_slice %15 {offsets = [0, 176], sizes = [1, 16], strides = [1, 1]} : vector<1x256xf32> to vector<1x16xf32>
      %28 = vector.extract_strided_slice %15 {offsets = [0, 192], sizes = [1, 16], strides = [1, 1]} : vector<1x256xf32> to vector<1x16xf32>
      %29 = vector.extract_strided_slice %15 {offsets = [0, 208], sizes = [1, 16], strides = [1, 1]} : vector<1x256xf32> to vector<1x16xf32>
      %30 = vector.extract_strided_slice %15 {offsets = [0, 224], sizes = [1, 16], strides = [1, 1]} : vector<1x256xf32> to vector<1x16xf32>
      %31 = vector.extract_strided_slice %15 {offsets = [0, 240], sizes = [1, 16], strides = [1, 1]} : vector<1x256xf32> to vector<1x16xf32>
      %32 = tpu.concatenate %16, %17, %18, %19, %20, %21, %22, %23, %24, %25, %26, %27, %28, %29, %30, %31 in 0 : vector<1x16xf32>, vector<1x16xf32>, vector<1x16xf32>, vector<1x16xf32>, vector<1x16xf32>, vector<1x16xf32>, vector<1x16xf32>, vector<1x16xf32>, vector<1x16xf32>, vector<1x16xf32>, vector<1x16xf32>, vector<1x16xf32>, vector<1x16xf32>, vector<1x16xf32>, vector<1x16xf32>, vector<1x16xf32> -> vector<16x16xf32>
      %c0_9 = arith.constant 0 : index
      %c0_10 = arith.constant 0 : index
      %33 = vector.load %arg6[%c0_9, %c0_10] : memref<1x256xf32, #tpu.memory_space<vmem>>, vector<1x256xf32>
      %34 = vector.extract_strided_slice %33 {offsets = [0, 0], sizes = [1, 16], strides = [1, 1]} : vector<1x256xf32> to vector<1x16xf32>
      %35 = vector.extract_strided_slice %33 {offsets = [0, 16], sizes = [1, 16], strides = [1, 1]} : vector<1x256xf32> to vector<1x16xf32>
      %36 = vector.extract_strided_slice %33 {offsets = [0, 32], sizes = [1, 16], strides = [1, 1]} : vector<1x256xf32> to vector<1x16xf32>
      %37 = vector.extract_strided_slice %33 {offsets = [0, 48], sizes = [1, 16], strides = [1, 1]} : vector<1x256xf32> to vector<1x16xf32>
      %38 = vector.extract_strided_slice %33 {offsets = [0, 64], sizes = [1, 16], strides = [1, 1]} : vector<1x256xf32> to vector<1x16xf32>
      %39 = vector.extract_strided_slice %33 {offsets = [0, 80], sizes = [1, 16], strides = [1, 1]} : vector<1x256xf32> to vector<1x16xf32>
      %40 = vector.extract_strided_slice %33 {offsets = [0, 96], sizes = [1, 16], strides = [1, 1]} : vector<1x256xf32> to vector<1x16xf32>
      %41 = vector.extract_strided_slice %33 {offsets = [0, 112], sizes = [1, 16], strides = [1, 1]} : vector<1x256xf32> to vector<1x16xf32>
      %42 = vector.extract_strided_slice %33 {offsets = [0, 128], sizes = [1, 16], strides = [1, 1]} : vector<1x256xf32> to vector<1x16xf32>
      %43 = vector.extract_strided_slice %33 {offsets = [0, 144], sizes = [1, 16], strides = [1, 1]} : vector<1x256xf32> to vector<1x16xf32>
      %44 = vector.extract_strided_slice %33 {offsets = [0, 160], sizes = [1, 16], strides = [1, 1]} : vector<1x256xf32> to vector<1x16xf32>
      %45 = vector.extract_strided_slice %33 {offsets = [0, 176], sizes = [1, 16], strides = [1, 1]} : vector<1x256xf32> to vector<1x16xf32>
      %46 = vector.extract_strided_slice %33 {offsets = [0, 192], sizes = [1, 16], strides = [1, 1]} : vector<1x256xf32> to vector<1x16xf32>
      %47 = vector.extract_strided_slice %33 {offsets = [0, 208], sizes = [1, 16], strides = [1, 1]} : vector<1x256xf32> to vector<1x16xf32>
      %48 = vector.extract_strided_slice %33 {offsets = [0, 224], sizes = [1, 16], strides = [1, 1]} : vector<1x256xf32> to vector<1x16xf32>
      %49 = vector.extract_strided_slice %33 {offsets = [0, 240], sizes = [1, 16], strides = [1, 1]} : vector<1x256xf32> to vector<1x16xf32>
      %50 = tpu.concatenate %34, %35, %36, %37, %38, %39, %40, %41, %42, %43, %44, %45, %46, %47, %48, %49 in 0 : vector<1x16xf32>, vector<1x16xf32>, vector<1x16xf32>, vector<1x16xf32>, vector<1x16xf32>, vector<1x16xf32>, vector<1x16xf32>, vector<1x16xf32>, vector<1x16xf32>, vector<1x16xf32>, vector<1x16xf32>, vector<1x16xf32>, vector<1x16xf32>, vector<1x16xf32>, vector<1x16xf32>, vector<1x16xf32> -> vector<16x16xf32>
      %51 = tpu.iota {dimensions = array<i32: 0>} : vector<16x16xi32>
      %c3_i32 = arith.constant 3 : i32
      %52 = vector.broadcast %c3_i32 : i32 to vector<16x16xi32>
      %53 = arith.cmpi sge, %51, %52 : vector<16x16xi32>
      %c3_i32_11 = arith.constant 3 : i32
      %54 = tpu.dynamic_rotate %32 by %c3_i32_11 dim 0 : vector<16x16xf32>, i32 -> vector<16x16xf32>
      %cst_12 = arith.constant 0.000000e+00 : f32
      %55 = vector.broadcast %cst_12 : f32 to vector<16x16xf32>
      %56 = arith.select %53, %54, %55 : vector<16x16xi1>, vector<16x16xf32>
      %c3_i32_13 = arith.constant 3 : i32
      %57 = tpu.dynamic_rotate %50 by %c3_i32_13 dim 0 : vector<16x16xf32>, i32 -> vector<16x16xf32>
      %cst_14 = arith.constant 0.000000e+00 : f32
      %58 = vector.broadcast %cst_14 : f32 to vector<16x16xf32>
      %59 = arith.select %53, %57, %58 : vector<16x16xi1>, vector<16x16xf32>
      %c2_i32_15 = arith.constant 2 : i32
      %60 = vector.broadcast %c2_i32_15 : i32 to vector<16x16xi32>
      %61 = arith.cmpi sge, %51, %60 : vector<16x16xi32>
      %c2_i32_16 = arith.constant 2 : i32
      %62 = tpu.dynamic_rotate %32 by %c2_i32_16 dim 0 : vector<16x16xf32>, i32 -> vector<16x16xf32>
      %cst_17 = arith.constant 0.000000e+00 : f32
      %63 = vector.broadcast %cst_17 : f32 to vector<16x16xf32>
      %64 = arith.select %61, %62, %63 : vector<16x16xi1>, vector<16x16xf32>
      %c2_i32_18 = arith.constant 2 : i32
      %65 = tpu.dynamic_rotate %50 by %c2_i32_18 dim 0 : vector<16x16xf32>, i32 -> vector<16x16xf32>
      %cst_19 = arith.constant 0.000000e+00 : f32
      %66 = vector.broadcast %cst_19 : f32 to vector<16x16xf32>
      %67 = arith.select %61, %65, %66 : vector<16x16xi1>, vector<16x16xf32>
      %c1_i32 = arith.constant 1 : i32
      %68 = vector.broadcast %c1_i32 : i32 to vector<16x16xi32>
      %69 = arith.cmpi sge, %51, %68 : vector<16x16xi32>
      %c1_i32_20 = arith.constant 1 : i32
      %70 = tpu.dynamic_rotate %32 by %c1_i32_20 dim 0 : vector<16x16xf32>, i32 -> vector<16x16xf32>
      %cst_21 = arith.constant 0.000000e+00 : f32
      %71 = vector.broadcast %cst_21 : f32 to vector<16x16xf32>
      %72 = arith.select %69, %70, %71 : vector<16x16xi1>, vector<16x16xf32>
      %c1_i32_22 = arith.constant 1 : i32
      %73 = tpu.dynamic_rotate %50 by %c1_i32_22 dim 0 : vector<16x16xf32>, i32 -> vector<16x16xf32>
      %cst_23 = arith.constant 0.000000e+00 : f32
      %74 = vector.broadcast %cst_23 : f32 to vector<16x16xf32>
      %75 = arith.select %69, %73, %74 : vector<16x16xi1>, vector<16x16xf32>
      %c15_i32 = arith.constant 15 : i32
      %76 = vector.broadcast %c15_i32 : i32 to vector<16x16xi32>
      %77 = arith.cmpi slt, %51, %76 : vector<16x16xi32>
      %c15_i32_24 = arith.constant 15 : i32
      %78 = tpu.dynamic_rotate %32 by %c15_i32_24 dim 0 : vector<16x16xf32>, i32 -> vector<16x16xf32>
      %cst_25 = arith.constant 0.000000e+00 : f32
      %79 = vector.broadcast %cst_25 : f32 to vector<16x16xf32>
      %80 = arith.select %77, %78, %79 : vector<16x16xi1>, vector<16x16xf32>
      %c15_i32_26 = arith.constant 15 : i32
      %81 = tpu.dynamic_rotate %50 by %c15_i32_26 dim 0 : vector<16x16xf32>, i32 -> vector<16x16xf32>
      %cst_27 = arith.constant 0.000000e+00 : f32
      %82 = vector.broadcast %cst_27 : f32 to vector<16x16xf32>
      %83 = arith.select %77, %81, %82 : vector<16x16xi1>, vector<16x16xf32>
      %c14_i32 = arith.constant 14 : i32
      %84 = vector.broadcast %c14_i32 : i32 to vector<16x16xi32>
      %85 = arith.cmpi slt, %51, %84 : vector<16x16xi32>
      %c14_i32_28 = arith.constant 14 : i32
      %86 = tpu.dynamic_rotate %32 by %c14_i32_28 dim 0 : vector<16x16xf32>, i32 -> vector<16x16xf32>
      %cst_29 = arith.constant 0.000000e+00 : f32
      %87 = vector.broadcast %cst_29 : f32 to vector<16x16xf32>
      %88 = arith.select %85, %86, %87 : vector<16x16xi1>, vector<16x16xf32>
      %c14_i32_30 = arith.constant 14 : i32
      %89 = tpu.dynamic_rotate %50 by %c14_i32_30 dim 0 : vector<16x16xf32>, i32 -> vector<16x16xf32>
      %cst_31 = arith.constant 0.000000e+00 : f32
      %90 = vector.broadcast %cst_31 : f32 to vector<16x16xf32>
      %91 = arith.select %85, %89, %90 : vector<16x16xi1>, vector<16x16xf32>
      %c13_i32 = arith.constant 13 : i32
      %92 = vector.broadcast %c13_i32 : i32 to vector<16x16xi32>
      %93 = arith.cmpi slt, %51, %92 : vector<16x16xi32>
      %c13_i32_32 = arith.constant 13 : i32
      %94 = tpu.dynamic_rotate %32 by %c13_i32_32 dim 0 : vector<16x16xf32>, i32 -> vector<16x16xf32>
      %cst_33 = arith.constant 0.000000e+00 : f32
      %95 = vector.broadcast %cst_33 : f32 to vector<16x16xf32>
      %96 = arith.select %93, %94, %95 : vector<16x16xi1>, vector<16x16xf32>
      %c13_i32_34 = arith.constant 13 : i32
      %97 = tpu.dynamic_rotate %50 by %c13_i32_34 dim 0 : vector<16x16xf32>, i32 -> vector<16x16xf32>
      %cst_35 = arith.constant 0.000000e+00 : f32
      %98 = vector.broadcast %cst_35 : f32 to vector<16x16xf32>
      %99 = arith.select %93, %97, %98 : vector<16x16xi1>, vector<16x16xf32>
      %100 = tpu.concatenate %56, %59, %64, %67, %72, %75, %32, %50, %80, %83, %88, %91, %96, %99 in 1 : vector<16x16xf32>, vector<16x16xf32>, vector<16x16xf32>, vector<16x16xf32>, vector<16x16xf32>, vector<16x16xf32>, vector<16x16xf32>, vector<16x16xf32>, vector<16x16xf32>, vector<16x16xf32>, vector<16x16xf32>, vector<16x16xf32>, vector<16x16xf32>, vector<16x16xf32> -> vector<16x224xf32>
      %c0_36 = arith.constant 0 : index
      %c0_37 = arith.constant 0 : index
      %101 = vector.load %arg2[%c0_36, %c0_37] : memref<224x16xf32, #tpu.memory_space<vmem>>, vector<224x16xf32>
      %cst_38 = arith.constant dense<0.000000e+00> : vector<16x16xf32>
      %102 = tpu.matmul %100, %101, %cst_38 {dimension_numbers = #tpu.dot_dimension_numbers<[1], [0], [0], [1], [0, 0, 1, 1], [], []>} : vector<16x224xf32>, vector<224x16xf32>, vector<16x16xf32> -> vector<16x16xf32>
      %c0_39 = arith.constant 0 : index
      %c0_40 = arith.constant 0 : index
      %c0_41 = arith.constant 0 : index
      %c0_42 = arith.constant 0 : index
      %103 = vector.load %arg4[%c0_39, %c0_40, %c0_41, %c0_42] : memref<1x1x16x16xf32, #tpu.memory_space<vmem>>, vector<1x1x16x16xf32>
      %104 = vector.shape_cast %103 : vector<1x1x16x16xf32> to vector<16x16xf32>
      %105 = vector.shape_cast %102 : vector<16x16xf32> to vector<1x1x16x16xf32>
      tpu.vector_store %arg4[%c0_39, %c0_40, %c0_41, %c0_42], %105 {strides = array<i32>} : memref<1x1x16x16xf32, #tpu.memory_space<vmem>>, vector<1x1x16x16xf32>,
    } else {
    }
    return
  }
  func.func @transform_0(%arg0: i32, %arg1: i32) -> (i32, i32) {
    %c0_i32 = arith.constant 0 : i32
    %c0_i32_0 = arith.constant 0 : i32
    %c0_i32_1 = arith.constant 0 : i32
    return %c0_i32, %c0_i32_0 : i32, i32
  }
  func.func @transform_1(%arg0: i32, %arg1: i32) -> (i32, i32, i32) {
    %c0_i32 = arith.constant 0 : i32
    %c0_i32_0 = arith.constant 0 : i32
    return %arg0, %arg1, %c0_i32 : i32, i32, i32
  }
  func.func @transform_2(%arg0: i32, %arg1: i32) -> (i32, i32, i32, i32) {
    %c0_i32 = arith.constant 0 : i32
    %c0_i32_0 = arith.constant 0 : i32
    %c0_i32_1 = arith.constant 0 : i32
    %c0_i32_2 = arith.constant 0 : i32
    return %arg0, %c0_i32, %c0_i32_0, %c0_i32_1 : i32, i32, i32, i32
  }
}

</mosaic_0001>

<bundles_post_ra>
// kernel: tpu_custom_call.1
= control target key start
LH: loop header
LB: loop body
LE: loop exit
PB: predicated region body
PF: predicated region fallthrough
CT: control target
= control target key end

     0   :  { %7 = vsyncpa [#allocation5], 0  ;;  %s1750_s0 = inlined_call_operand.vmem [shape: f32[224,16], index: 0, kind: input, shape index: {}]   ;;  %s1751_s1 = inlined_call_operand.vmem [shape: f32[2,24,256], index: 1, kind: input, shape index: {}]   ;;  %s1752_s2 = inlined_call_operand.hbm [shape: f32[2,1,16,16], index: 2, kind: output, shape index: {}]  }
   0x1   :  { %9 = vsyncpa [#allocation5 + $0x1], 0  ;;  %s1194_s9 = smov 0   ;;  %s1196_s10 = smov 0  }
   0x2   :  { %s1198_s11 = smov 0   ;;  %s1200_s12 = smov 0  }
   0x3   :  { %s1202_s13 = smov 0   ;;  %s1204_s14 = smov 0  }
   0x4   :  { %s1206_s15 = smov 0   ;;  %s1208_s16 = smov 0  }
   0x5 LB: > { %s862_s17 = sadd.s32 4294967295, %s1164_s16   ;;  %s863_s18 = sadd.s32 4294967294, %s1164_s16   ;;  %s1164_s16 = sphi %s1208_s16, %s15_s16   ;;  %s1160_s15 = sphi %s1206_s15, %s1763_s15   ;;  %s1156_s14 = sphi %s1204_s14, %s1762_s14   ;;  %s1152_s13 = sphi %s1202_s13, %s1761_s13   ;;  %s1148_s12 = sphi %s1200_s12, %s1760_s12   ;;  %s1144_s11 = sphi %s1198_s11, %s1759_s11   ;;  %s1140_s10 = sphi %s1196_s10, %s1758_s10   ;;  %s1136_s9 = sphi %s1194_s9, %s1757_s9  }
   0x6   : > { %s24_s19 = sadd.s32 1, %s1156_s14  ;;  %s27_s20 = sadd.s32 1, %s1160_s15 }
   0x7   : > { %p25_p0 = scmp.ge.s32.totalorder %s24_s19, 3  ;;  %p93_p1 = scmp.ne.s32.totalorder %s1144_s11, %s1140_s10 }
   0x8   : > { %p94_p2 = scmp.eq.s32.totalorder %s862_s17, 5  ;;  %p99_p4 = scmp.ne.s32.totalorder %s1140_s10, %s1136_s9 }
   0x9   : > { %s1765_s19 = smov (%p25_p0, %s24_s19), 0  ;;  %s1767_s20 = smov (!%p25_p0, %s27_s20), %s1160_s15 }
   0xa   : > { %p1243_p3 = por %p94_p2, %p93_p1  ;;  %p29_p5 = scmp.ge.s32.totalorder %s1767_s20, 2 }
   0xb   : > { %p100_p6 = scmp.eq.s32.totalorder %s863_s18, 5  ;;  %p866_p7 = scmp.ge.s32.totalorder %s1164_s16, 1 }
   0xc   : > { %p133_p8 = scmp.lt.s32.totalorder %s1164_s16, 7  ;;  %s1769_s20 = smov (%p29_p5, %s1767_s20), 0 }
   0xd   : > { %p1253_p9 = por %p100_p6, %p99_p4  ;;  %s80_s23 = ssub.s32 %s1160_s15, %s1769_s20 }
   0xe   : > { %p134_p10 = pnand %p866_p7, %p133_p8  ;;  %s83_s24 = sadd.s32 1, %s1144_s11 }
   0xf   : > { %p81_p11 = scmp.eq.s32.totalorder %s80_s23, 0  ;;  %s1753_s26 = sand.u32 (!%p134_p10), 1, %s1140_s10  }
  0x10   : > { %137 = sbr.rel (%p134_p10) target bundleno = 630 (0x276), region = 28  ;;  %p159_p12 = scmp.lt.s32.totalorder (!%p134_p10), %s1152_s13, 1 }
  0x11   : > { %s1261_s25 = scalar_select %p81_p11, %s1144_s11, %s83_s24  }
  0x12   : > { %s1267_s27 = sshll.u32 (!%p134_p10), %s1753_s26, 4  ;;  %p161_p13 = scmp.lt.s32.totalorder (!%p134_p10), %s1148_s12, 2 }
  0x13   : > { %s1276_s17 = scalar_lea.vmem (!%p134_p10), [#allocation4], %s1267_s27  ;;  %p870_p0 = scmp.ne.s32.totalorder (!%p134_p10), %s1148_s12, 0 }
  0x17   : > { %s160_s28 = scalar_select %p159_p12, %s1152_s13, 1 }
  0x18   : > { %s162_s29 = scalar_select %p161_p13, %s1148_s12, 2 }
  0x19   : > { %s951_s30 = smul.u32 6, %s160_s28  ;;  %v204_v24 = vlaneseq (!%p870_p0)  ;;  %v1166_v25 = vmov (!%p870_p0), 1966171168  }
  0x1a   : > { %s868_s3 = sshll.u32 %s162_s29, 1  ;;  %v202_v26 = vunpack.c.l.s4 (!%p870_p0), %v1166_v25 }
  0x1b   : > { %s165_s4 = sadd.s32 %s951_s30, %s868_s3  ;;  %v205_v27 = vshrl.u32 (!%p870_p0), %v204_v24, 7  ;;  %vm218_vm0 = vcmp.lt.s32.totalorder (!%p870_p0), %v204_v24, 256 }
  0x1c   : > { %s869_s5 = sshll.u32 %s165_s4, 3  ;;  %v203_v29 = vunpack.c.0.s8 (!%p870_p0), %v202_v26 }
  0x1d   : > { %s167_s8 = scalar_lea.vmem %s1751_s1, %s869_s5 }
  0x1e   : > { %v168_v0 = vld [vmem:[%s167_s8] sm:$0xff]  ;;  %v169_v1 = vld [vmem:[%s167_s8 + $0x8] sm:$0xff]  ;;  %v206_v31 = vsub.s32 (!%p870_p0), %v203_v29, %v205_v27 }
  0x1f   : > { %v170_v2 = vrot.slane %v168_v0, 4  ;;  %v176_v3 = vrot.slane %v169_v1, 4 }
  0x21   : > { %v171_v4 = vadd.f32 %v170_v2, %v168_v0  ;;  %v177_v5 = vadd.f32 %v176_v3, %v169_v1  ;;  %v183_v6 = vmax.f32 %v168_v0, %v170_v2  ;;  %v189_v7 = vmax.f32 %v169_v1, %v176_v3 }
  0x23   : > { %v172_v8 = vrot.slane %v171_v4, 2  ;;  %v178_v9 = vrot.slane %v177_v5, 2  ;;  %v184_v10 = vrot.slane %v183_v6, 2  ;;  %v190_v11 = vrot.slane %v189_v7, 2  ;;  %197 = sbr.rel (%p870_p0) target bundleno = 50 (0x32), region = 32 }
  0x25   : > { %v173_v12 = vadd.f32 %v172_v8, %v171_v4  ;;  %v179_v13 = vadd.f32 %v178_v9, %v177_v5  ;;  %v185_v14 = vmax.f32 %v183_v6, %v184_v10  ;;  %v191_v15 = vmax.f32 %v189_v7, %v190_v11 }
  0x27   : > { %v174_v16 = vrot.slane %v173_v12, 1  ;;  %v180_v17 = vrot.slane %v179_v13, 1  ;;  %v186_v18 = vrot.slane %v185_v14, 1  ;;  %v192_v19 = vrot.slane %v191_v15, 1 }
  0x29   : > { %v175_v20 = vadd.f32 %v174_v16, %v173_v12  ;;  %v181_v21 = vadd.f32 %v180_v17, %v179_v13  ;;  %v187_v22 = vmax.f32 %v185_v14, %v186_v18  ;;  %v193_v23 = vmax.f32 %v191_v15, %v192_v19 }
  0x2b   : > { %v200_v28 = vcombine.low %v175_v20, %v181_v21  ;;  %v223_v30 = vcombine.low %v187_v22, %v193_v23 }
  0x2d   : > { %v207_v32 = vrot.slane %v200_v28, %v206_v31  ;;  %v230_v33 = vrot.slane %v223_v30, %v206_v31 }
  0x2f   : > { %v214_v34 = vrot.slane %v207_v32, %v206_v31  ;;  %v237_v35 = vrot.slane %v230_v33, %v206_v31 }
  0x31   : > { %220 = vst.msk [vmem:[#allocation2] sm:$0x3] %vm218_vm0, %v214_v34  ;;  %239 = vst.msk [vmem:[#allocation3] sm:$0x3] %vm218_vm0, %v237_v35 }
  0x32 PF: > { %p871_p1 = scmp.le.s32.totalorder %s1148_s12, 0 }
  0x33   : > { %v251_v36 = vlaneseq (!%p871_p1)  ;;  %v1167_v37 = vmov (!%p871_p1), 1966171168   ;;  %v247_v40 = vcombine.low (!%p871_p1), %v175_v20, %v181_v21  ;;  %v272_v42 = vcombine.low (!%p871_p1), %v187_v22, %v193_v23 }
  0x34   : > { %243 = sbr.rel (%p871_p1) target bundleno = 65 (0x41), region = 36  ;;  %v249_v38 = vunpack.c.l.s4 (!%p871_p1), %v1167_v37 }
  0x35   : > { %v252_v39 = vshrl.u32 (!%p871_p1), %v251_v36, 7  ;;  %vm266_vm1 = vcmp.lt.s32.totalorder (!%p871_p1), %v251_v36, 256 }
  0x36   : > { %v250_v41 = vunpack.c.0.s8 (!%p871_p1), %v249_v38 }
  0x38   : > { %v253_v43 = vsub.s32 (!%p871_p1), %v250_v41, %v252_v39  ;;  %v244_v46 = vld [vmem:[#allocation2] sm:$0x3] (!%p871_p1)  ;;  %v269_v47 = vld [vmem:[#allocation3] sm:$0x3] (!%p871_p1) }
  0x3a   : > { %v254_v44 = vrot.slane (!%p871_p1), %v247_v40, %v253_v43  ;;  %v279_v45 = vrot.slane (!%p871_p1), %v272_v42, %v253_v43 }
  0x3c   : > { %v261_v48 = vrot.slane %v254_v44, %v253_v43  ;;  %v286_v49 = vrot.slane %v279_v45, %v253_v43 }
  0x3e   : > { %v263_v50 = vadd.f32 %v261_v48, %v244_v46  ;;  %v288_v51 = vmax.f32 %v269_v47, %v286_v49 }
  0x40   : > { %268 = vst.msk [vmem:[#allocation2] sm:$0x3] %vm266_vm1, %v263_v50  ;;  %289 = vst.msk [vmem:[#allocation3] sm:$0x3] %vm266_vm1, %v288_v51 }
  0x41 PF: > { %p872_p2 = scmp.ne.s32.totalorder %s1148_s12, 2 }
  0x42   : > { %v296_v52 = vlaneseq (!%p872_p2)  ;;  %s1168_s12 = smov (!%p872_p2), 112   ;;  %s1169_s18 = smov (!%p872_p2), 96   ;;  %v655_v62 = vld [vmem:[%s1750_s0] sm:$0xff] (!%p872_p2)  ;;  %v656_v63 = vld [vmem:[%s1750_s0 + $0x8] sm:$0xff] (!%p872_p2)  ;;  %v657_v0 = vld [vmem:[%s1750_s0 + $0x10] sm:$0xff] (!%p872_p2)  ;;  %v1175_v1 = vmov (!%p872_p2), 0.0|0.0  }
  0x43   : > { %293 = sbr.rel (%p872_p2) target bundleno = 604 (0x25c), region = 40  ;;  %s1170_s23 = smov (!%p872_p2), 80   ;;  %881 = vmatprep.subr.bf16.mxu0 (!%p872_p2), %v1175_v1  ;;  %923 = vmatprep.subr.bf16.mxu1 (!%p872_p2), %v1175_v1  ;;  %v882_v2 = vpack.c.bf16 (!%p872_p2), %v656_v63, %v655_v62  ;;  %v658_v3 = vld [vmem:[%s1750_s0 + $0x18] sm:$0xff] (!%p872_p2)  ;;  %v659_v5 = vld [vmem:[%s1750_s0 + $0x20] sm:$0xff] (!%p872_p2)  ;;  %v660_v6 = vld [vmem:[%s1750_s0 + $0x28] sm:$0xff] (!%p872_p2)  ;;  %vm347_vm2 = vcmask (!%p872_p2), 1040384  }
  0x44   : > { %v1281_v53 = vshrl.u32 (!%p872_p2), %v296_v52, 7  ;;  %s1171_s24 = smov (!%p872_p2), 64   ;;  %s1172_s27 = smov (!%p872_p2), 48   ;;  %v885_v4 = vpack.c.bf16 (!%p872_p2), %v658_v3, %v657_v0  ;;  %v888_v7 = vpack.c.bf16 (!%p872_p2), %v660_v6, %v659_v5  ;;  %v661_v8 = vld [vmem:[%s1750_s0 + $0x30] sm:$0xff] (!%p872_p2)  ;;  %v662_v9 = vld [vmem:[%s1750_s0 + $0x38] sm:$0xff] (!%p872_p2)  ;;  %v663_v11 = vld [vmem:[%s1750_s0 + $0x40] sm:$0xff] (!%p872_p2) }
  0x45   : > { %s1173_s28 = smov (!%p872_p2), 32   ;;  %s1174_s29 = smov (!%p872_p2), 16   ;;  %883 = vmatpush1.bf16.msra.mxu0 (!%p872_p2), %v882_v2  ;;  %937 = vmatpush1.bf16.msra.mxu1 (!%p872_p2), %v882_v2  ;;  %v891_v10 = vpack.c.bf16 (!%p872_p2), %v662_v9, %v661_v8  ;;  %v664_v12 = vld [vmem:[%s1750_s0 + $0x48] sm:$0xff] (!%p872_p2)  ;;  %v665_v36 = vld [vmem:[%s1750_s0 + $0x50] sm:$0xff] (!%p872_p2)  ;;  %v666_v37 = vld [vmem:[%s1750_s0 + $0x58] sm:$0xff] (!%p872_p2)  ;;  %vm349_vm3 = vcmask (!%p872_p2), 1041408  }
  0x46   : > { %v298_v56 = vsub.s32 (!%p872_p2), 0, %v1281_v53  ;;  %v323_v57 = vsub.s32 (!%p872_p2), 1, %v1281_v53  ;;  %884 = vmatprep.subr.bf16.mxu0 (!%p872_p2), %v1175_v1  ;;  %924 = vmatprep.subr.bf16.mxu1 (!%p872_p2), %v1175_v1  ;;  %v894_v13 = vpack.c.bf16 (!%p872_p2), %v664_v12, %v663_v11  ;;  %v897_v38 = vpack.c.bf16 (!%p872_p2), %v666_v37, %v665_v36  ;;  %v667_v41 = vld [vmem:[%s1750_s0 + $0x60] sm:$0xff] (!%p872_p2)  ;;  %v668_v42 = vld [vmem:[%s1750_s0 + $0x68] sm:$0xff] (!%p872_p2) }
  0x47   : > { %v1283_v54 = vld [vmem:[#allocation3] sm:$0x3] (!%p872_p2)  ;;  %v1285_v55 = vld [vmem:[#allocation2] sm:$0x3] (!%p872_p2)  ;;  %vm351_vm4 = vcmask (!%p872_p2), 1042432   ;;  %vm353_vm5 = vcmask (!%p872_p2), 1043456   ;;  %v900_v47 = vpack.c.bf16 (!%p872_p2), %v668_v42, %v667_v41 }
  0x48   : > { %v373_v58 = vrot.slane (!%p872_p2), %v1283_v54, %v298_v56  ;;  %v299_v59 = vrot.slane (!%p872_p2), %v1285_v55, %v298_v56  ;;  %v1292_v60 = vrot.slane (!%p872_p2), %v1283_v54, %v323_v57  ;;  %v1296_v61 = vrot.slane (!%p872_p2), %v1285_v55, %v323_v57 }
  0x49   : > { %886 = vmatpush1.bf16.msra.mxu0 (!%p872_p2), %v885_v4  ;;  %938 = vmatpush1.bf16.msra.mxu1 (!%p872_p2), %v885_v4  ;;  %vm355_vm6 = vcmask (!%p872_p2), 1044480   ;;  %vm357_vm7 = vcmask (!%p872_p2), 1045504   ;;  %vm359_vm8 = vcmask (!%p872_p2), 1046528   ;;  %vm487_vm9 = vcmp.lt.s32.totalorder (!%p872_p2), %v1281_v53, 7 }
  0x4a   : > { %374 = vrot.lane.b32.xlu0 %v373_v58, %s1168_s12  ;;  %300 = vrot.lane.b32.xlu1 %v299_v59, %s1168_s12  ;;  %vm502_vm10 = vcmp.lt.s32.totalorder %v1281_v53, 6  ;;  %vm517_vm11 = vcmp.lt.s32.totalorder %v1281_v53, 5  ;;  %vm442_vm12 = vcmp.lt.s32.totalorder %v1281_v53, 3  ;;  %vm438_vm13 = vcmp.ge.s32.totalorder %v1281_v53, 3 }
  0x4b   : > { %887 = vmatprep.subr.bf16.mxu0 %v1175_v1  ;;  %925 = vmatprep.subr.bf16.mxu1 %v1175_v1  ;;  %vm457_vm14 = vcmp.lt.s32.totalorder %v1281_v53, 2  ;;  %vm453_vm15 = vcmp.ge.s32.totalorder %v1281_v53, 2  ;;  %vm472_vm1 = vcmp.lt.s32.totalorder %v1281_v53, 1 }
  0x4d   : > { %889 = vmatpush1.bf16.msra.mxu0 %v888_v7  ;;  %939 = vmatpush1.bf16.msra.mxu1 %v888_v7 }
  0x4e   : > { %400 = vrot.lane.b32.xlu0 %v1292_v60, %s1168_s12  ;;  %326 = vrot.lane.b32.xlu1 %v1296_v61, %s1168_s12 }
  0x4f   : > { %890 = vmatprep.subr.bf16.mxu0 %v1175_v1  ;;  %926 = vmatprep.subr.bf16.mxu1 %v1175_v1 }
  0x51   : > { %892 = vmatpush1.bf16.msra.mxu0 %v891_v10  ;;  %940 = vmatpush1.bf16.msra.mxu1 %v891_v10 }
  0x52   : > { %377 = vrot.lane.b32.xlu0 %v373_v58, %s1169_s18  ;;  %403 = vrot.lane.b32.xlu1 %v1292_v60, %s1169_s18 }
  0x53   : > { %893 = vmatprep.subr.bf16.mxu0 %v1175_v1  ;;  %927 = vmatprep.subr.bf16.mxu1 %v1175_v1 }
  0x55   : > { %895 = vmatpush1.bf16.msra.mxu0 %v894_v13  ;;  %941 = vmatpush1.bf16.msra.mxu1 %v894_v13 }
  0x56   : > { %303 = vrot.lane.b32.xlu0 %v299_v59, %s1169_s18  ;;  %329 = vrot.lane.b32.xlu1 %v1296_v61, %s1169_s18 }
  0x57   : > { %896 = vmatprep.subr.bf16.mxu0 %v1175_v1  ;;  %928 = vmatprep.subr.bf16.mxu1 %v1175_v1 }
  0x59   : > { %898 = vmatpush1.bf16.msra.mxu0 %v897_v38  ;;  %942 = vmatpush1.bf16.msra.mxu1 %v897_v38 }
  0x5a   : > { %380 = vrot.lane.b32.xlu0 %v373_v58, %s1170_s23  ;;  %406 = vrot.lane.b32.xlu1 %v1292_v60, %s1170_s23 }
  0x5b   : > { %899 = vmatprep.subr.bf16.mxu0 %v1175_v1  ;;  %929 = vmatprep.subr.bf16.mxu1 %v1175_v1 }
  0x5d   : > { %901 = vmatpush1.bf16.msra.mxu0 %v900_v47  ;;  %943 = vmatpush1.bf16.msra.mxu1 %v900_v47 }
  0x5e   : > { %306 = vrot.lane.b32.xlu0 %v299_v59, %s1170_s23  ;;  %332 = vrot.lane.b32.xlu1 %v1296_v61, %s1170_s23 }
  0x5f   : > { %902 = vmatprep.subr.bf16.mxu0 %v1175_v1  ;;  %930 = vmatprep.subr.bf16.mxu1 %v1175_v1 }
  0x62   : > { %383 = vrot.lane.b32.xlu0 %v373_v58, %s1171_s24  ;;  %409 = vrot.lane.b32.xlu1 %v1292_v60, %s1171_s24 }
  0x66   : > { %309 = vrot.lane.b32.xlu0 %v299_v59, %s1171_s24  ;;  %335 = vrot.lane.b32.xlu1 %v1296_v61, %s1171_s24 }
  0x6a   : > { %386 = vrot.lane.b32.xlu0 %v373_v58, %s1172_s27  ;;  %412 = vrot.lane.b32.xlu1 %v1292_v60, %s1172_s27 }
  0x6e   : > { %312 = vrot.lane.b32.xlu0 %v299_v59, %s1172_s27  ;;  %338 = vrot.lane.b32.xlu1 %v1296_v61, %s1172_s27 }
  0x72   : > { %389 = vrot.lane.b32.xlu0 %v373_v58, %s1173_s28  ;;  %415 = vrot.lane.b32.xlu1 %v1292_v60, %s1173_s28 }
  0x76   : > { %315 = vrot.lane.b32.xlu0 %v299_v59, %s1173_s28  ;;  %341 = vrot.lane.b32.xlu1 %v1296_v61, %s1173_s28 }
  0x7a   : > { %392 = vrot.lane.b32.xlu0 %v373_v58, %s1174_s29  ;;  %418 = vrot.lane.b32.xlu1 %v1292_v60, %s1174_s29 }
  0x7e   : > { %318 = vrot.lane.b32.xlu0 %v299_v59, %s1174_s29  ;;  %344 = vrot.lane.b32.xlu1 %v1296_v61, %s1174_s29 }
  0xbc   : > { %v375_v14 = vpop.permute.xlu0 %374  ;;  %v301_v15 = vpop.permute.xlu1 %300 }
  0xbd   : > { %v421_v39 = vsel %vm347_vm2, %v1283_v54, %v375_v14  ;;  %v348_v48 = vsel %vm347_vm2, %v1285_v55, %v301_v15 }
  0xc0   : > { %v401_v16 = vpop.permute.xlu0 %400  ;;  %v327_v17 = vpop.permute.xlu1 %326 }
  0xc1   : > { %v428_v40 = vsel %vm347_vm2, %v1292_v60, %v401_v16  ;;  %v361_v49 = vsel %vm347_vm2, %v1296_v61, %v327_v17  ;;  %v669_v60 = vld [vmem:[%s1750_s0 + $0x70] sm:$0xff]  ;;  %v670_v61 = vld [vmem:[%s1750_s0 + $0x78] sm:$0xff]  ;;  %vm468_vm2 = vcmp.ge.s32.totalorder %v1281_v53, 1 }
  0xc2   : > { %v903_v3 = vpack.c.bf16 %v670_v61, %v669_v60  ;;  %v671_v61 = vld [vmem:[%s1750_s0 + $0x80] sm:$0xff] }
  0xc4   : > { %v378_v18 = vpop.permute.xlu0 %377  ;;  %v404_v19 = vpop.permute.xlu1 %403  ;;  %904 = vmatpush1.bf16.msra.mxu0 %v903_v3  ;;  %944 = vmatpush1.bf16.msra.mxu1 %v903_v3 }
  0xc5   : > { %v422_v43 = vsel %vm349_vm3, %v421_v39, %v378_v18  ;;  %v429_v44 = vsel %vm349_vm3, %v428_v40, %v404_v19  ;;  %905 = vmatprep.subr.bf16.mxu0 %v1175_v1  ;;  %931 = vmatprep.subr.bf16.mxu1 %v1175_v1 }
  0xc8   : > { %v304_v20 = vpop.permute.xlu0 %303  ;;  %v330_v21 = vpop.permute.xlu1 %329 }
  0xc9   : > { %v350_v52 = vsel %vm349_vm3, %v348_v48, %v304_v20  ;;  %v362_v54 = vsel %vm349_vm3, %v361_v49, %v330_v21 }
  0xcc   : > { %v381_v22 = vpop.permute.xlu0 %380  ;;  %v407_v23 = vpop.permute.xlu1 %406 }
  0xcd   : > { %v423_v50 = vsel %vm351_vm4, %v422_v43, %v381_v22  ;;  %v430_v51 = vsel %vm351_vm4, %v429_v44, %v407_v23 }
  0xd0   : > { %v307_v24 = vpop.permute.xlu0 %306  ;;  %v333_v25 = vpop.permute.xlu1 %332 }
  0xd1   : > { %v352_v58 = vsel %vm351_vm4, %v350_v52, %v307_v24  ;;  %v363_v4 = vsel %vm351_vm4, %v362_v54, %v333_v25 }
  0xd4   : > { %v384_v26 = vpop.permute.xlu0 %383  ;;  %v410_v27 = vpop.permute.xlu1 %409 }
  0xd5   : > { %v424_v56 = vsel %vm353_vm5, %v423_v50, %v384_v26  ;;  %v431_v57 = vsel %vm353_vm5, %v430_v51, %v410_v27  ;;  %v1467_v26 = vadd.s32 8, %v1281_v53 }
  0xd7   : > { %vm484_vm0 = vcmp.lt.s32.totalorder %v1467_v26, 15  ;;  %vm499_vm3 = vcmp.lt.s32.totalorder %v1467_v26, 14  ;;  %vm514_vm4 = vcmp.lt.s32.totalorder %v1467_v26, 13  ;;  %v681_v26 = vld [vmem:[%s1750_s0 + $0xd0] sm:$0xff] }
  0xd8   : > { %v310_v28 = vpop.permute.xlu0 %309  ;;  %v336_v29 = vpop.permute.xlu1 %335 }
  0xd9   : > { %v354_v5 = vsel %vm353_vm5, %v352_v58, %v310_v28  ;;  %v364_v8 = vsel %vm353_vm5, %v363_v4, %v336_v29  ;;  %v673_v4 = vld [vmem:[%s1750_s0 + $0x90] sm:$0xff]  ;;  %vm624_vm5 = vcmask 130048  }
  0xdc   : > { %v387_v30 = vpop.permute.xlu0 %386  ;;  %v413_v31 = vpop.permute.xlu1 %412 }
  0xdd   : > { %v425_v59 = vsel %vm355_vm6, %v424_v56, %v387_v30  ;;  %v432_v55 = vsel %vm355_vm6, %v431_v57, %v413_v31 }
  0xe0   : > { %v313_v32 = vpop.permute.xlu0 %312  ;;  %v339_v33 = vpop.permute.xlu1 %338 }
  0xe1   : > { %v356_v9 = vsel %vm355_vm6, %v354_v5, %v313_v32  ;;  %v365_v12 = vsel %vm355_vm6, %v364_v8, %v339_v33  ;;  %v674_v5 = vld [vmem:[%s1750_s0 + $0x98] sm:$0xff]  ;;  %vm627_vm6 = vcmask 261120  }
  0xe4   : > { %v390_v34 = vpop.permute.xlu0 %389  ;;  %v416_v35 = vpop.permute.xlu1 %415 }
  0xe5   : > { %v426_v62 = vsel %vm357_vm7, %v425_v59, %v390_v34  ;;  %v433_v63 = vsel %vm357_vm7, %v432_v55, %v416_v35 }
  0xe8   : > { %v316_v45 = vpop.permute.xlu0 %315  ;;  %v342_v46 = vpop.permute.xlu1 %341 }
  0xe9   : > { %v358_v13 = vsel %vm357_vm7, %v356_v9, %v316_v45  ;;  %v366_v14 = vsel %vm357_vm7, %v365_v12, %v342_v46  ;;  %vm630_vm7 = vcmask 392192  }
  0xec   : > { %v393_v0 = vpop.permute.xlu0 %392  ;;  %v419_v2 = vpop.permute.xlu1 %418 }
  0xed   : > { %v1429_v6 = vsel %vm359_vm8, %v426_v62, %v393_v0  ;;  %v1432_v7 = vsel %vm359_vm8, %v433_v63, %v419_v2  ;;  %v672_v62 = vld [vmem:[%s1750_s0 + $0x88] sm:$0xff] }
  0xee   : > { %v492_v10 = vrot.slane %v1429_v6, 1  ;;  %v493_v11 = vrot.slane %v1432_v7, 1  ;;  %v507_v18 = vrot.slane %v1429_v6, 2  ;;  %v508_v19 = vrot.slane %v1432_v7, 2 }
  0xef   : > { %v447_v22 = vrot.slane %v1429_v6, 5  ;;  %v448_v23 = vrot.slane %v1432_v7, 5  ;;  %v522_v25 = vrot.slane %v1429_v6, 3  ;;  %v523_v32 = vrot.slane %v1432_v7, 3 }
  0xf0   : > { %v319_v15 = vpop.permute.xlu0 %318  ;;  %v345_v16 = vpop.permute.xlu1 %344  ;;  %v494_v17 = vsel %vm487_vm9, %v492_v10, %v493_v11  ;;  %v509_v31 = vsel %vm502_vm10, %v507_v18, %v508_v19  ;;  %v462_v37 = vrot.slane %v1429_v6, 6  ;;  %v463_v38 = vrot.slane %v1432_v7, 6 }
  0xf1   : > { %v1454_v20 = vsel %vm359_vm8, %v358_v13, %v319_v15  ;;  %v1457_v21 = vsel %vm359_vm8, %v366_v14, %v345_v16  ;;  %586 = vrot.lane.b32.xlu0 %v494_v17, %s1174_s29  ;;  %v450_v35 = vsel %vm442_vm12, %v448_v23, %v447_v22  ;;  %v524_v45 = vsel %vm517_vm11, %v522_v25, %v523_v32 }
  0xf2   : > { %v1035_v24 = vpack.i.bf16 %v1457_v21, %v1454_v20  ;;  %v500_v27 = vrot.slane %v1454_v20, 2  ;;  %v501_v28 = vrot.slane %v1457_v21, 2  ;;  %v440_v29 = vrot.slane %v1454_v20, 5 }
  0xf3   : > { %v441_v30 = vrot.slane %v1457_v21, 5  ;;  %v455_v33 = vrot.slane %v1454_v20, 6  ;;  %v456_v34 = vrot.slane %v1457_v21, 6  ;;  %v515_v39 = vrot.slane %v1454_v20, 3 }
  0xf4   : > { %1036 = vrot.lane.b32.xlu1 %v1035_v24, %s1169_s18  ;;  %v503_v41 = vsel %vm502_vm10, %v500_v27, %v501_v28  ;;  %v516_v42 = vrot.slane %v1457_v21, 3  ;;  %v485_v43 = vrot.slane %v1454_v20, 1  ;;  %v486_v44 = vrot.slane %v1457_v21, 1 }
  0xf5   : > { %602 = vrot.lane.b32.xlu0 %v509_v31, %s1172_s27  ;;  %v444_v36 = vsel %vm442_vm12, %v441_v30, %v440_v29  ;;  %v449_v46 = vsel %vm442_vm12, %v447_v22, %v448_v23  ;;  %v451_v47 = vsel %vm438_vm13, %v450_v35, 0.0  ;;  %v459_v48 = vsel %vm457_vm14, %v456_v34, %v455_v33 }
  0xf6   : > { %v1493_v40 = vsel %vm438_vm13, %v444_v36, 0.0  ;;  %v465_v49 = vsel %vm457_vm14, %v463_v38, %v462_v37  ;;  %v489_v50 = vsel %vm487_vm9, %v486_v44, %v485_v43  ;;  %v518_v52 = vsel %vm517_vm11, %v515_v39, %v516_v42 }
  0xf7   : > { %v1523_v51 = vsel %vm484_vm0, %v489_v50, 0.0  ;;  %v1040_v54 = vpack.i.bf16 %v449_v46, %v451_v47  ;;  %v458_v56 = vsel %vm457_vm14, %v455_v33, %v456_v34  ;;  %v460_v57 = vsel %vm453_vm15, %v459_v48, 0.0  ;;  %v677_v33 = vld [vmem:[%s1750_s0 + $0xb0] sm:$0xff]  ;;  %v678_v34 = vld [vmem:[%s1750_s0 + $0xb8] sm:$0xff] }
  0xf8   : > { %594 = vrot.lane.b32.xlu1 %v503_v41, %s1173_s28  ;;  %v464_v58 = vsel %vm457_vm14, %v462_v37, %v463_v38  ;;  %v466_v59 = vsel %vm453_vm15, %v465_v49, 0.0  ;;  %v470_v55 = vrot.slane %v1454_v20, 7  ;;  %v471_v60 = vrot.slane %v1457_v21, 7  ;;  %v679_v41 = vld [vmem:[%s1750_s0 + $0xc0] sm:$0xff] }
  0xf9   : > { %618 = vrot.lane.b32.xlu0 %v524_v45, %s1170_s23  ;;  %v477_v63 = vrot.slane %v1429_v6, 7  ;;  %v478_v0 = vrot.slane %v1432_v7, 7  ;;  %v1045_v2 = vpack.i.bf16 %v458_v56, %v460_v57  ;;  %v1550_v3 = vsel %vm487_vm9, %v485_v43, %v486_v44 }
  0xfa   : > { %v1050_v8 = vpack.i.bf16 %v464_v58, %v466_v59  ;;  %v1560_v9 = vsel %vm442_vm12, %v440_v29, %v441_v30  ;;  %v906_v12 = vpack.c.bf16 %v672_v62, %v671_v61  ;;  %v495_v13 = vsel %vm487_vm9, %v493_v11, %v492_v10  ;;  %v675_v10 = vld [vmem:[%s1750_s0 + $0xa0] sm:$0xff]  ;;  %v676_v11 = vld [vmem:[%s1750_s0 + $0xa8] sm:$0xff] }
  0xfb   : > { %v474_v14 = vsel %vm472_vm1, %v471_v60, %v470_v55  ;;  %v504_v15 = vsel %vm502_vm10, %v501_v28, %v500_v27  ;;  %v480_v16 = vsel %vm472_vm1, %v478_v0, %v477_v63  ;;  %v909_v17 = vpack.c.bf16 %v674_v5, %v673_v4 }
  0xfc   : > { %610 = vrot.lane.b32.xlu1 %v518_v52, %s1171_s24  ;;  %907 = vmatpush1.bf16.msra.mxu0 %v906_v12  ;;  %v497_v22 = vsel %vm484_vm0, %v495_v13, 0.0  ;;  %v473_v23 = vsel %vm472_vm1, %v470_v55, %v471_v60  ;;  %v475_v24 = vsel %vm468_vm2, %v474_v14, 0.0  ;;  %v506_v27 = vsel %vm499_vm3, %v504_v15, 0.0 }
  0xfd   : > { %1041 = vrot.lane.b32.xlu0 %v1040_v54, %s1174_s29  ;;  %945 = vmatpush1.bf16.msra.mxu1 %v906_v12  ;;  %v479_v28 = vsel %vm472_vm1, %v477_v63, %v478_v0  ;;  %v481_v29 = vsel %vm468_vm2, %v480_v16, 0.0  ;;  %v912_v30 = vpack.c.bf16 %v676_v11, %v675_v10  ;;  %v1055_v31 = vpack.i.bf16 %v473_v23, %v475_v24 }
  0xfe   : > { %908 = vmatprep.subr.bf16.mxu0 %v1175_v1  ;;  %932 = vmatprep.subr.bf16.mxu1 %v1175_v1  ;;  %v1060_v35 = vpack.i.bf16 %v479_v28, %v481_v29  ;;  %v510_v36 = vsel %vm502_vm10, %v508_v19, %v507_v18  ;;  %v519_v37 = vsel %vm517_vm11, %v516_v42, %v515_v39  ;;  %v680_v18 = vld [vmem:[%s1750_s0 + $0xc8] sm:$0xff]  ;;  %v682_v42 = vld [vmem:[%s1750_s0 + $0xd8] sm:$0xff]  ;;  %vm633_vm8 = vcmask 523264  }
  0xff   : > { %v915_v38 = vpack.c.bf16 %v678_v34, %v677_v33  ;;  %v512_v19 = vsel %vm499_vm3, %v510_v36, 0.0  ;;  %v521_v20 = vsel %vm514_vm4, %v519_v37, 0.0  ;;  %v525_v21 = vsel %vm517_vm11, %v523_v32, %v522_v25 }
 0x100   : > { %1046 = vrot.lane.b32.xlu1 %v1045_v2, %s1173_s28  ;;  %910 = vmatpush1.bf16.msra.mxu0 %v909_v17  ;;  %v918_v39 = vpack.c.bf16 %v680_v18, %v679_v41  ;;  %v527_v43 = vsel %vm514_vm4, %v525_v21, 0.0  ;;  %v1065_v53 = vpack.i.bf16 %v1432_v7, %v1429_v6  ;;  %v921_v25 = vpack.c.bf16 %v682_v42, %v681_v26 }
 0x101   : > { %1051 = vrot.lane.b32.xlu0 %v1050_v8, %s1172_s27  ;;  %946 = vmatpush1.bf16.msra.mxu1 %v909_v17  ;;  %vm636_vm9 = vcmask 654336   ;;  %vm639_vm10 = vcmask 785408   ;;  %vm642_vm11 = vcmask 916480  }
 0x102   : > { %911 = vmatprep.subr.bf16.mxu0 %v1175_v1  ;;  %933 = vmatprep.subr.bf16.mxu1 %v1175_v1 }
 0x104   : > { %588 = vrot.lane.b32.xlu1 %v497_v22, %s1174_s29  ;;  %913 = vmatpush1.bf16.msra.mxu0 %v912_v30 }
 0x105   : > { %596 = vrot.lane.b32.xlu0 %v506_v27, %s1173_s28  ;;  %947 = vmatpush1.bf16.msra.mxu1 %v912_v30 }
 0x106   : > { %914 = vmatprep.subr.bf16.mxu0 %v1175_v1  ;;  %934 = vmatprep.subr.bf16.mxu1 %v1175_v1 }
 0x108   : > { %1056 = vrot.lane.b32.xlu1 %v1055_v31, %s1171_s24  ;;  %916 = vmatpush1.bf16.msra.mxu0 %v915_v38 }
 0x109   : > { %1061 = vrot.lane.b32.xlu0 %v1060_v35, %s1170_s23  ;;  %948 = vmatpush1.bf16.msra.mxu1 %v915_v38 }
 0x10a   : > { %917 = vmatprep.subr.bf16.mxu0 %v1175_v1  ;;  %935 = vmatprep.subr.bf16.mxu1 %v1175_v1 }
 0x10c   : > { %604 = vrot.lane.b32.xlu1 %v512_v19, %s1172_s27  ;;  %919 = vmatpush1.bf16.msra.mxu0 %v918_v39 }
 0x10d   : > { %612 = vrot.lane.b32.xlu0 %v521_v20, %s1171_s24  ;;  %949 = vmatpush1.bf16.msra.mxu1 %v918_v39 }
 0x10e   : > { %920 = vmatprep.subr.bf16.mxu0 %v1175_v1  ;;  %936 = vmatprep.subr.bf16.mxu1 %v1175_v1 }
 0x110   : > { %620 = vrot.lane.b32.xlu1 %v527_v43, %s1170_s23  ;;  %922 = vmatpush1.bf16.msra.mxu0 %v921_v25 }
 0x111   : > { %1066 = vrot.lane.b32.xlu0 %v1065_v53, %s1168_s12  ;;  %950 = vmatpush1.bf16.msra.mxu1 %v921_v25 }
 0x163   : > { %v587_v32 = vpop.permute.xlu0 %586 }
 0x164   : > { %v645_v6 = vsel %vm624_vm5, %v1550_v3, %v587_v32 }
 0x166   : > { %v1037_v44 = vpop.permute.xlu1 %1036 }
 0x167   : > { %v603_v45 = vpop.permute.xlu0 %602  ;;  %v1039_v30 = vunpack.i.h.bf16 %v1037_v44  ;;  %v1038_v31 = vunpack.i.l.bf16 %v1037_v44 }
 0x16a   : > { %v595_v7 = vpop.permute.xlu1 %594 }
 0x16b   : > { %v647_v46 = vsel %vm627_vm6, %v645_v6, %v595_v7  ;;  %v619_v47 = vpop.permute.xlu0 %618 }
 0x16c   : > { %v649_v1 = vsel %vm630_vm7, %v647_v46, %v603_v45 }
 0x16e   : > { %v611_v48 = vpop.permute.xlu1 %610 }
 0x16f   : > { %v651_v49 = vsel %vm633_vm8, %v649_v1, %v611_v48  ;;  %v1042_v50 = vpop.permute.xlu0 %1041 }
 0x170   : > { %v653_v52 = vsel %vm636_vm9, %v651_v49, %v619_v47  ;;  %v1043_v57 = vunpack.i.l.bf16 %v1042_v50  ;;  %v1044_v58 = vunpack.i.h.bf16 %v1042_v50 }
 0x171   : > { %873 = vmatprep.mubr.msk.f32.mxu0 %vm639_vm10, %v653_v52 }
 0x172   : > { %v1047_v54 = vpop.permute.xlu1 %1046  ;;  %v625_v62 = vsel %vm624_vm5, %v1493_v40, %v1043_v57  ;;  %v626_v0 = vsel %vm624_vm5, %v1560_v9, %v1044_v58 }
 0x173   : > { %v1052_v56 = vpop.permute.xlu0 %1051  ;;  %v1048_v59 = vunpack.i.l.bf16 %v1047_v54  ;;  %v1049_v60 = vunpack.i.h.bf16 %v1047_v54 }
 0x174   : > { %v1053_v63 = vunpack.i.l.bf16 %v1052_v56  ;;  %v1054_v3 = vunpack.i.h.bf16 %v1052_v56 }
 0x175   : > { %v628_v2 = vsel %vm627_vm6, %v625_v62, %v1048_v59  ;;  %v629_v5 = vsel %vm627_vm6, %v626_v0, %v1049_v60 }
 0x176   : > { %v589_v55 = vpop.permute.xlu1 %588  ;;  %v631_v15 = vsel %vm630_vm7, %v628_v2, %v1053_v63  ;;  %v632_v40 = vsel %vm630_vm7, %v629_v5, %v1054_v3 }
 0x177   : > { %v597_v61 = vpop.permute.xlu0 %596  ;;  %v646_v8 = vsel %vm624_vm5, %v1523_v51, %v589_v55 }
 0x178   : > { %v648_v16 = vsel %vm627_vm6, %v646_v8, %v597_v61 }
 0x17a   : > { %v1057_v4 = vpop.permute.xlu1 %1056 }
 0x17b   : > { %v1059_v12 = vunpack.i.h.bf16 %v1057_v4  ;;  %v1058_v13 = vunpack.i.l.bf16 %v1057_v4  ;;  %v1062_v14 = vpop.permute.xlu0 %1061 }
 0x17c   : > { %v1064_v17 = vunpack.i.h.bf16 %v1062_v14  ;;  %v1063_v9 = vunpack.i.l.bf16 %v1062_v14 }
 0x17d   : > { %v634_v11 = vsel %vm633_vm8, %v631_v15, %v1058_v13  ;;  %v635_v22 = vsel %vm633_vm8, %v632_v40, %v1059_v12 }
 0x17e   : > { %v605_v10 = vpop.permute.xlu1 %604  ;;  %v637_v28 = vsel %vm636_vm9, %v634_v11, %v1063_v9  ;;  %v638_v29 = vsel %vm636_vm9, %v635_v22, %v1064_v17 }
 0x17f   : > { %v650_v23 = vsel %vm630_vm7, %v648_v16, %v605_v10  ;;  %v613_v24 = vpop.permute.xlu0 %612  ;;  %v640_v37 = vsel %vm639_vm10, %v637_v28, %v1038_v31  ;;  %v641_v38 = vsel %vm639_vm10, %v638_v29, %v1039_v30 }
 0x180   : > { %v652_v51 = vsel %vm633_vm8, %v650_v23, %v613_v24 }
 0x182   : > { %v621_v27 = vpop.permute.xlu1 %620 }
 0x183   : > { %v1067_v33 = vpop.permute.xlu0 %1066  ;;  %v654_v34 = vsel %vm636_vm9, %v652_v51, %v621_v27 }
 0x184   : > { %v1069_v35 = vunpack.i.h.bf16 %v1067_v33  ;;  %v1068_v36 = vunpack.i.l.bf16 %v1067_v33  ;;  %874 = vmatprep.mubr.msk.f32.mxu1 %vm639_vm10, %v654_v34 }
 0x186   : > { %v643_v41 = vsel %vm642_vm11, %v640_v37, %v1068_v36  ;;  %v644_v18 = vsel %vm642_vm11, %v641_v38, %v1069_v35 }
 0x187   : > { %754 = vmatmul.mubr.f32.vlgmr.msra.gmra.mrb[0].mxu0 %v643_v41  ;;  %759 = vmatmul.mubr.f32.vlgmr.msra.gmra.mrb[0].mxu1 %v644_v18 }
 0x25a   : > { %v755_v19 = vpop.f32.mrb[0].mxu0  ;;  %v760_v20 = vpop.f32.mrb[0].mxu1 }
 0x25b   : > { %764 = vst.msk [vmem:[%s1276_s17] sm:$0xff] %vm624_vm5, %v755_v19  ;;  %765 = vst.msk [vmem:[%s1276_s17 + $0x8] sm:$0xff] %vm624_vm5, %v760_v20  ;;  %v757_v21 = vpop.f32.mrb[1].mxu0  ;;  %v762_v39 = vpop.f32.mrb[1].mxu1 }
 0x25c PF: > { %s880_s12 = sshll.u32 %s1152_s13, 8  ;;  %s780_s5 = sshll.u32 %s1276_s17, 4  ;;  %s1694_s5 = int_to_ptr.vmem [resolvable:$true] %s780_s5 }
 0x25d   : > { %s1691_s4 = scalar_lea.hbm %s1752_s2, %s880_s12  ;;  %s1756_s29 = sand.u32 1, %s1140_s10  }
 0x25e   : > { %s1698_s26 = scalar_lea.sflag [#allocation5], %s1756_s29  ;;  %s1070_s28 = scalar_lea.vmem %s1694_s5, 256 }
 0x25f   : > { %p1071_p4 = scmp.ne.s32.totalorder %s1694_s5, %s1070_s28  ;;  %s1176_s13 = smov [#allocation4]  }
 0x260   : > { %s1074_s6 = sshll.u32 %s1176_s13, 4  ;;  %s1075_s6 = int_to_ptr.vmem [resolvable:$false] %s1074_s6 }
 0x261   : > { %p1072_p5 = pnand %p1071_p4, %p1243_p3  ;;  %s1076_s7 = scalar_lea.vmem %s1075_s6, 512 }
 0x262   : > { %p1077_p7 = scmp.lt.s32.totalorder %s1694_s5, %s1075_s6  ;;  %p1078_p8 = scmp.lt.s32.totalorder %s1076_s7, %s1070_s28 }
 0x263   : > { %p1073_p6 = pneg %p1072_p5 }
 0x264   : > { %p1079_p10 = por %p1078_p8, %p1077_p7 }
 0x266   : > { %p1080_p11 = pnand %p1079_p10, %p1073_p6 }
 0x268   : > { %1083 = shalt.err (!%p1080_p11)
}
 0x269   : > { %s1084_s17 = scalar_lea.hbm %s1691_s4, 256  ;;  %s1088_s30 = scalar_lea.hbm %s1752_s2, 512 }
 0x26a   : > { %p1085_p12 = scmp.ne.s32.totalorder %s1691_s4, %s1084_s17  ;;  %p1089_p1 = scmp.lt.u32.totalorder %s1691_s4, %s1752_s2 }
 0x26b   : > { %p1090_p2 = scmp.lt.u32.totalorder %s1088_s30, %s1084_s17  ;;  %p1092_p5 = scmp.lt.u32.totalorder %s1084_s17, %s1691_s4 }
 0x26c   : > { %p1086_p13 = pnand %p1085_p12, %p1243_p3 }
 0x26d   : > { %p1091_p4 = por %p1090_p2, %p1089_p1 }
 0x26e   : > { %p1087_p0 = pneg %p1086_p13 }
 0x26f   : > { %p1093_p6 = por %p1092_p5, %p1091_p4 }
 0x271   : > { %p1094_p7 = pnand %p1093_p6, %p1087_p0 }
 0x273   : > { %1097 = shalt.err (!%p1094_p7)
}
 0x274   : > { %s1177_s12 = smov 128   ;;  %s1178_s23 = smov 8  }
 0x275   : > { %952 = dma.vmem_to_hbm [thread:$0]  (%p1243_p3), %s1694_s5, 256, %s1691_s4, %s1698_s26, %s1177_s12, %s1177_s12, %s1178_s23  }
 0x276 PF: > { %p958_p8 = scmp.ge.s32.totalorder %s1164_s16, 2  ;;  %s795_s24 = sand.u32 1, %s1136_s9  }
 0x277   : > { %s796_s29 = scalar_lea.sflag [#allocation5], %s795_s24 }
 0x278   : > { %p955_p10 = pnand %p958_p8, %p1253_p9 }
 0x27a   : > { %1131 = dma.done.wait (!%p955_p10), %s796_s29, 256  }
 0x27b   : > { %1133 = vsyncadd (!%p955_p10), %s796_s29, 4294967040  ;;  %s15_s16 = sadd.s32 1, %s1164_s16   ;;  %s1757_s9 = smov %s1140_s10 }
 0x27c   : > { %p12_p11 = scmp.ge.s32.totalorder %s15_s16, 8   ;;  %s1758_s10 = smov %s1144_s11 }
 0x27d   : > { %s1759_s11 = smov %s1261_s25  ;;  %s1760_s12 = smov %s1156_s14 }
 0x27e   : > { %s1761_s13 = smov %s1160_s15  ;;  %s1762_s14 = smov %s1765_s19 }
 0x27f   : > { %s1763_s15 = smov %s1769_s20  ;;  %14 = sbr.rel (!%p12_p11) target bundleno = 5 (0x5), region = 75 }
 0x286   :  { %801 = vsyncpa [#allocation5], 1 }
 0x287   :  { %803 = vsyncpa [#allocation5 + $0x1], 1 }

</bundles_post_ra>
